<compile_context>
chip_gen: v6e
topology: v6e:2x2x1
jax: 0.10.0
libtpu: 0.0.40
codegen_flags: <defaults>
</compile_context>

<pallas_src>
import jax
import jax.numpy as jnp
from jax.experimental import pallas as pl
from jax.experimental.pallas import tpu as pltpu


def _round_up(x, m):
    return ((x + m - 1) // m) * m


def valuenet_kernel(x_ref, w1_ref, b1_ref, w2t_ref, b2_ref, o_ref):
    # fc1: [H, S] @ [S, TB] -> [H, TB], f32 accumulation on the MXU.
    h = jnp.dot(w1_ref[...], x_ref[...], preferred_element_type=jnp.float32)
    # bias + ReLU on the VPU (b1 is [H, 1], broadcast along lanes).
    h = jnp.maximum(h + b1_ref[...], 0.0)
    # fc2 as VPU multiply + sublane reduction (no M=1 MXU matmul): -> [1, TB]
    out = jnp.sum(h * w2t_ref[...], axis=0, keepdims=True)
    o_ref[...] = out + b2_ref[0, 0]


def value_net_forward_sb(x_sb, w1, b1, w2, b2, *, block_b=2048,
                         stream_dtype=jnp.bfloat16):
    """x_sb: [state_dim, B] (batch on lanes).  Torch-layout params:
       w1: [H, S], b1: [H], w2: [1, H], b2: [1].  Returns [1, B] f32."""
    S, B = x_sb.shape
    H = w1.shape[0]

    # Batch tile: multiple of 128 lanes; large tiles amortize the ~0.35us/step
    # pipeline overhead.  VMEM footprint is tiny even at tb=4096.
    tb = min(int(block_b), _round_up(B, 128))
    grid = (pl.cdiv(B, tb),)

    x_s = x_sb.astype(stream_dtype)
    w1_s = w1.astype(stream_dtype)
    b1_c = b1.reshape(H, 1).astype(jnp.float32)
    w2t = w2.reshape(H, 1).astype(jnp.float32)   # [1, H] -> [H, 1]
    b2_s = jnp.asarray(b2, jnp.float32).reshape(1, 1)

    itemsize = jnp.dtype(stream_dtype).itemsize
    out = pl.pallas_call(
        valuenet_kernel,
        out_shape=jax.ShapeDtypeStruct((1, B), jnp.float32),
        grid_spec=pltpu.PrefetchScalarGridSpec(
            num_scalar_prefetch=0,
            grid=grid,
            in_specs=[
                # x tiles stream along the batch/lane axis (auto double-buffered)
                pl.BlockSpec((S, tb), lambda i: (0, i)),
                # weights resident across the whole grid
                pl.BlockSpec((H, S), lambda i: (0, 0)),
                pl.BlockSpec((H, 1), lambda i: (0, 0)),
                pl.BlockSpec((H, 1), lambda i: (0, 0)),
                # b2 as an SMEM scalar
                pl.BlockSpec((1, 1), lambda i: (0, 0),
                             memory_space=pltpu.MemorySpace.SMEM),
            ],
            out_specs=pl.BlockSpec((1, tb), lambda i: (0, i)),
        ),
        compiler_params=pltpu.CompilerParams(
            dimension_semantics=("parallel",),   # shard batch tiles over TCs
            vmem_limit_bytes=32 * 1024 * 1024,   # safe across v5e/v6e/v7x
        ),
        cost_estimate=pl.CostEstimate(
            flops=2 * B * H * (S + 2),
            transcendentals=0,
            bytes_accessed=(itemsize * (B * S + H * S)
                            + 4 * (H + H + 1 + B)),
        ),
    )(x_s, w1_s, b1_c, w2t, b2_s)
    return out


def value_net_forward(x, w1, b1, w2, b2, *, block_b=2048,
                      stream_dtype=jnp.bfloat16):
    """Torch-style entry: x [B, state_dim] f32 -> [B, 1] f32."""
    # Single fused transpose+cast; prefer value_net_forward_sb to avoid it.
    x_sb = x.T.astype(stream_dtype)
    out = value_net_forward_sb(x_sb, w1, b1, w2, b2,
                               block_b=block_b, stream_dtype=stream_dtype)
    return out.T   # [1, B] -> [B, 1]


def init_params(key, state_dim, hidden_dim):
    """Deterministic PyTorch-Linear-style init (uniform +-1/sqrt(fan_in)),
    stored in torch layout: w [out, in], b [out]."""
    k1, k2, k3, k4 = jax.random.split(key, 4)
    bound1 = 1.0 / jnp.sqrt(jnp.float32(state_dim))
    bound2 = 1.0 / jnp.sqrt(jnp.float32(hidden_dim))
    w1 = jax.random.uniform(k1, (hidden_dim, state_dim), jnp.float32, -bound1, bound1)
    b1 = jax.random.uniform(k2, (hidden_dim,), jnp.float32, -bound1, bound1)
    w2 = jax.random.uniform(k3, (1, hidden_dim), jnp.float32, -bound2, bound2)
    b2 = jax.random.uniform(k4, (1,), jnp.float32, -bound2, bound2)
    return w1, b1, w2, b2


if __name__ == "__main__":
    # CartPole-v1: state_dim = 4; module default hidden_dim = 128.
    state_dim = 4
    hidden_dim = 128
    batch = 8

    key = jax.random.PRNGKey(0)
    kx, kp = jax.random.split(key)
    x = jax.random.normal(kx, (batch, state_dim), jnp.float32)
    w1, b1, w2, b2 = init_params(kp, state_dim, hidden_dim)

    # Pure-f32 reference (torch semantics: y = relu(x W1^T + b1) W2^T + b2)
    ref_f32 = jnp.maximum(x @ w1.T + b1[None, :], 0.0) @ w2.T + b2.reshape(1, 1)

    # 1) f32 streaming: exact module semantics, tight tolerance.
    out_f32 = value_net_forward(x, w1, b1, w2, b2, stream_dtype=jnp.float32)
    out_f32 = jax.block_until_ready(out_f32)
    assert out_f32.shape == (batch, 1)
    assert jnp.allclose(out_f32, ref_f32, atol=1e-5, rtol=1e-5)

    # 2) bf16 streaming (default, halves streamed HBM bytes), f32 accumulation.
    out_bf16 = value_net_forward(x, w1, b1, w2, b2)   # stream_dtype=bf16
    out_bf16 = jax.block_until_ready(out_bf16)
    assert out_bf16.shape == (batch, 1)
    # Reference with the same bf16 input rounding, f32 accumulation.
    x_bf = x.astype(jnp.bfloat16).astype(jnp.float32)
    w1_bf = w1.astype(jnp.bfloat16).astype(jnp.float32)
    ref_bf = jnp.maximum(x_bf @ w1_bf.T + b1[None, :], 0.0) @ w2.T + b2.reshape(1, 1)
    assert jnp.allclose(out_bf16, ref_bf, atol=1e-4, rtol=1e-4)
    assert jnp.allclose(out_bf16, ref_f32, atol=5e-2, rtol=5e-2)

    print("KERNEL_OK")
</pallas_src>

<mosaic_0001>
module attributes {stable_mosaic.version = 11 : i64} {
  func.func @valuenet_kernel(%arg0: i32, %arg1: memref<4x128xf32, #tpu.memory_space<vmem>>, %arg2: memref<128x4xf32, #tpu.memory_space<vmem>>, %arg3: memref<128x1xf32, #tpu.memory_space<vmem>>, %arg4: memref<128x1xf32, #tpu.memory_space<vmem>>, %arg5: memref<1x1xf32, #tpu.memory_space<smem>>, %arg6: memref<1x128xf32, #tpu.memory_space<vmem>>) attributes {dimension_semantics = [#tpu.dimension_semantics<parallel>], iteration_bounds = array<i64: 1>, scalar_prefetch = 0 : i64, scratch_operands = 0 : i64, tpu.core_type = #tpu.core_type<tc>, window_params = [{transform_indices = @transform_0, window_bounds = array<i64: 4, 128>}, {pipeline_mode = #tpu.pipeline_mode<synchronous>, transform_indices = @transform_1, window_bounds = array<i64: 128, 4>}, {pipeline_mode = #tpu.pipeline_mode<synchronous>, transform_indices = @transform_2, window_bounds = array<i64: 128, 1>}, {pipeline_mode = #tpu.pipeline_mode<synchronous>, transform_indices = @transform_3, window_bounds = array<i64: 128, 1>}, {transform_indices = @transform_4, window_bounds = array<i64: 1, 1>}, {transform_indices = @transform_5, window_bounds = array<i64: 1, 128>}]} {
    %c0 = arith.constant 0 : index
    %c0_0 = arith.constant 0 : index
    %0 = vector.load %arg2[%c0, %c0_0] : memref<128x4xf32, #tpu.memory_space<vmem>>, vector<128x4xf32>
    %c0_1 = arith.constant 0 : index
    %c0_2 = arith.constant 0 : index
    %1 = vector.load %arg1[%c0_1, %c0_2] : memref<4x128xf32, #tpu.memory_space<vmem>>, vector<4x128xf32>
    %cst = arith.constant dense<0.000000e+00> : vector<128x128xf32>
    %2 = tpu.matmul %0, %1, %cst {dimension_numbers = #tpu.dot_dimension_numbers<[1], [0], [0], [1], [0, 0, 1, 1], [], []>} : vector<128x4xf32>, vector<4x128xf32>, vector<128x128xf32> -> vector<128x128xf32>
    %c0_3 = arith.constant 0 : index
    %c0_4 = arith.constant 0 : index
    %3 = vector.load %arg3[%c0_3, %c0_4] : memref<128x1xf32, #tpu.memory_space<vmem>>, vector<128x1xf32>
    %4 = vector.broadcast %3 : vector<128x1xf32> to vector<128x128xf32>
    %5 = arith.addf %2, %4 : vector<128x128xf32>
    %cst_5 = arith.constant 0.000000e+00 : f32
    %6 = vector.broadcast %cst_5 : f32 to vector<128x128xf32>
    %7 = arith.maximumf %5, %6 : vector<128x128xf32>
    %c0_6 = arith.constant 0 : index
    %c0_7 = arith.constant 0 : index
    %8 = vector.load %arg4[%c0_6, %c0_7] : memref<128x1xf32, #tpu.memory_space<vmem>>, vector<128x1xf32>
    %9 = vector.broadcast %8 : vector<128x1xf32> to vector<128x128xf32>
    %10 = arith.mulf %7, %9 : vector<128x128xf32>
    %cst_8 = arith.constant dense<0.000000e+00> : vector<128xf32>
    %11 = vector.multi_reduction <add>, %10, %cst_8 [0] : vector<128x128xf32> to vector<128xf32>
    %12 = vector.shape_cast %11 : vector<128xf32> to vector<1x128xf32>
    %c0_9 = arith.constant 0 : index
    %c0_10 = arith.constant 0 : index
    %13 = memref.load %arg5[%c0_9, %c0_10] : memref<1x1xf32, #tpu.memory_space<smem>>
    %14 = vector.broadcast %13 : f32 to vector<1x128xf32>
    %15 = arith.addf %12, %14 : vector<1x128xf32>
    %c0_11 = arith.constant 0 : index
    %c0_12 = arith.constant 0 : index
    %16 = vector.load %arg6[%c0_11, %c0_12] : memref<1x128xf32, #tpu.memory_space<vmem>>, vector<1x128xf32>
    tpu.vector_store %arg6[%c0_11, %c0_12], %15 {strides = array<i32>} : memref<1x128xf32, #tpu.memory_space<vmem>>, vector<1x128xf32>,
    return
  }
  func.func @transform_0(%arg0: i32) -> (i32, i32) {
    %c0_i32 = arith.constant 0 : i32
    %c0_i32_0 = arith.constant 0 : i32
    return %c0_i32, %arg0 : i32, i32
  }
  func.func @transform_1(%arg0: i32) -> (i32, i32) {
    %c0_i32 = arith.constant 0 : i32
    %c0_i32_0 = arith.constant 0 : i32
    %c0_i32_1 = arith.constant 0 : i32
    return %c0_i32, %c0_i32_0 : i32, i32
  }
  func.func @transform_2(%arg0: i32) -> (i32, i32) {
    %c0_i32 = arith.constant 0 : i32
    %c0_i32_0 = arith.constant 0 : i32
    %c0_i32_1 = arith.constant 0 : i32
    return %c0_i32, %c0_i32_0 : i32, i32
  }
  func.func @transform_3(%arg0: i32) -> (i32, i32) {
    %c0_i32 = arith.constant 0 : i32
    %c0_i32_0 = arith.constant 0 : i32
    %c0_i32_1 = arith.constant 0 : i32
    return %c0_i32, %c0_i32_0 : i32, i32
  }
  func.func @transform_4(%arg0: i32) -> (i32, i32) {
    %c0_i32 = arith.constant 0 : i32
    %c0_i32_0 = arith.constant 0 : i32
    %c0_i32_1 = arith.constant 0 : i32
    return %c0_i32, %c0_i32_0 : i32, i32
  }
  func.func @transform_5(%arg0: i32) -> (i32, i32) {
    %c0_i32 = arith.constant 0 : i32
    %c0_i32_0 = arith.constant 0 : i32
    return %c0_i32, %arg0 : i32, i32
  }
}

</mosaic_0001>

<bundles_post_ra>
// kernel: tpu_custom_call.1
= control target key start
LH: loop header
LB: loop body
LE: loop exit
PB: predicated region body
PF: predicated region fallthrough
CT: control target
= control target key end

     0   :  { %vm184_vm0 = vcmask 1043456   ;;  %v588_v3 = vmov 0   ;;  %vm135_vm1 = vcmask 31744   ;;  %s793_s0 = inlined_call_operand.vmem [shape: f32[4,8], index: 0, kind: input, shape index: {}]   ;;  %s794_s1 = inlined_call_operand.vmem [shape: f32[128,4], index: 1, kind: input, shape index: {}]   ;;  %s795_s2 = inlined_call_operand.vmem [shape: f32[128,1], index: 2, kind: input, shape index: {}]   ;;  %s796_s3 = inlined_call_operand.vmem [shape: f32[128,1], index: 3, kind: input, shape index: {}]   ;;  %s797_s4 = inlined_call_operand.<no memory space> [shape: f32[1,1], index: 4, kind: input, shape index: {}]   ;;  %s798_s5 = inlined_call_operand.hbm [shape: f32[1,8], index: 5, kind: output, shape index: {}]  }
   0x1   :  { %v38_v0 = vld [vmem:[%s793_s0] sm:$0xf]  ;;  %v41_v1 = vld [vmem:[%s795_s2 + $0x10] sm:$0xff]  ;;  %565 = vset.pattern.permute.xlu1 %v588_v3  ;;  %564 = vset.pattern.permute.xlu0 %v588_v3  ;;  %v23_v6 = vld [vmem:[%s794_s1 + $0x8] sm:$0xff] }
   0x2   :  { %v39_v2 = vld [vmem:[%s795_s2] sm:$0xff]  ;;  %534 = vmatprep.subr.msk.mxu0 %vm184_vm0, %v38_v0  ;;  %560 = vmatprep.subr.msk.mxu1 %vm184_vm0, %v38_v0  ;;  %v31_v7 = vld [vmem:[%s794_s1 + $0x48] sm:$0xff]  ;;  %v42_v8 = vld [vmem:[%s795_s2 + $0x18] sm:$0xff] }
   0x3   :  { %v22_v4 = vld [vmem:[%s794_s1] sm:$0xff]  ;;  %67 = vperm.xlu1 %565, %v41_v1   ;;  %57 = vperm.xlu0 %564, %v39_v2   ;;  %v40_v9 = vld [vmem:[%s795_s2 + $0x8] sm:$0xff]  ;;  %v24_v10 = vld [vmem:[%s794_s1 + $0x10] sm:$0xff] }
   0x4   :  { %v30_v5 = vld [vmem:[%s794_s1 + $0x40] sm:$0xff]  ;;  %535 = vmatpush3.msk.msra.mxu0 %vm184_vm0, %v38_v0  ;;  %561 = vmatpush3.msk.msra.mxu1 %vm184_vm0, %v38_v0  ;;  %v32_v11 = vld [vmem:[%s794_s1 + $0x50] sm:$0xff]  ;;  %v25_v12 = vld [vmem:[%s794_s1 + $0x18] sm:$0xff] }
   0x5   :  { %536 = vmatprep.mubr.msk.f32.mxu0 %vm135_vm1, %v22_v4  ;;  %548 = vmatprep.mubr.msk.f32.mxu1 %vm135_vm1, %v30_v5  ;;  %v33_v13 = vld [vmem:[%s794_s1 + $0x58] sm:$0xff]  ;;  %v349_v14 = vld [vmem:[%s796_s3] sm:$0xff]  ;;  %v27_v18 = vld [vmem:[%s794_s1 + $0x28] sm:$0xff] }
   0x6   :  { %537 = vmatmul.mubr.msk.f32.vlgmr.msra.gmra.mxu0 %vm135_vm1, %v23_v6  ;;  %549 = vmatmul.mubr.msk.f32.vlgmr.msra.gmra.mxu1 %vm135_vm1, %v31_v7  ;;  %v43_v15 = vld [vmem:[%s795_s2 + $0x20] sm:$0xff]  ;;  %v35_v19 = vld [vmem:[%s794_s1 + $0x68] sm:$0xff]  ;;  %v351_v20 = vld [vmem:[%s796_s3 + $0x10] sm:$0xff] }
   0x7   :  { %72 = vperm.xlu1 %565, %v42_v8   ;;  %62 = vperm.xlu0 %564, %v40_v9   ;;  %v26_v16 = vld [vmem:[%s794_s1 + $0x20] sm:$0xff]  ;;  %v350_v21 = vld [vmem:[%s796_s3 + $0x8] sm:$0xff]  ;;  %v28_v22 = vld [vmem:[%s794_s1 + $0x30] sm:$0xff] }
   0x8   :  { %539 = vmatprep.mubr.msk.f32.mxu0 %vm135_vm1, %v24_v10  ;;  %551 = vmatprep.mubr.msk.f32.mxu1 %vm135_vm1, %v32_v11  ;;  %v34_v17 = vld [vmem:[%s794_s1 + $0x60] sm:$0xff]  ;;  %v36_v23 = vld [vmem:[%s794_s1 + $0x70] sm:$0xff]  ;;  %v29_v24 = vld [vmem:[%s794_s1 + $0x38] sm:$0xff] }
   0x9   :  { %v37_v25 = vld [vmem:[%s794_s1 + $0x78] sm:$0xff]  ;;  %v44_v27 = vld [vmem:[%s795_s2 + $0x28] sm:$0xff] }
   0xa   :  { %540 = vmatmul.mubr.msk.f32.gmra.mxu0 %vm135_vm1, %v25_v12  ;;  %552 = vmatmul.mubr.msk.f32.gmra.mxu1 %vm135_vm1, %v33_v13  ;;  %v352_v26 = vld [vmem:[%s796_s3 + $0x18] sm:$0xff] }
   0xb   :  { %367 = vperm.xlu1 %565, %v349_v14   ;;  %77 = vperm.xlu0 %564, %v43_v15  }
   0xc   :  { %542 = vmatprep.mubr.msk.f32.mxu0 %vm135_vm1, %v26_v16  ;;  %554 = vmatprep.mubr.msk.f32.mxu1 %vm135_vm1, %v34_v17 }
   0xe   :  { %543 = vmatmul.mubr.msk.f32.gmra.mxu0 %vm135_vm1, %v27_v18  ;;  %555 = vmatmul.mubr.msk.f32.gmra.mxu1 %vm135_vm1, %v35_v19 }
   0xf   :  { %377 = vperm.xlu1 %565, %v351_v20   ;;  %372 = vperm.xlu0 %564, %v350_v21  }
  0x10   :  { %545 = vmatprep.mubr.msk.f32.mxu0 %vm135_vm1, %v28_v22  ;;  %557 = vmatprep.mubr.msk.f32.mxu1 %vm135_vm1, %v36_v23 }
  0x11   :  { %11 = vsyncpa [#allocation4], 0  ;;  %v353_v28 = vld [vmem:[%s796_s3 + $0x20] sm:$0xff]  ;;  %v45_v29 = vld [vmem:[%s795_s2 + $0x30] sm:$0xff]  ;;  %s589_s10 = smov [#allocation3]  }
  0x12   :  { %546 = vmatmul.mubr.msk.f32.gmra.mxu0 %vm135_vm1, %v29_v24  ;;  %558 = vmatmul.mubr.msk.f32.gmra.mxu1 %vm135_vm1, %v37_v25  ;;  %v354_v30 = vld [vmem:[%s796_s3 + $0x28] sm:$0xff]  ;;  %v46_v31 = vld [vmem:[%s795_s2 + $0x38] sm:$0xff]  ;;  %v355_v32 = vld [vmem:[%s796_s3 + $0x30] sm:$0xff]  ;;  %s492_s11 = sshll.u32 %s589_s10, 4  ;;  %s493_s11 = int_to_ptr.vmem [resolvable:$true] %s492_s11 }
  0x13   :  { %382 = vperm.xlu1 %565, %v352_v26   ;;  %82 = vperm.xlu0 %564, %v44_v27   ;;  %v47_v33 = vld [vmem:[%s795_s2 + $0x40] sm:$0xff]  ;;  %v356_v34 = vld [vmem:[%s796_s3 + $0x38] sm:$0xff]  ;;  %v48_v35 = vld [vmem:[%s795_s2 + $0x48] sm:$0xff]  ;;  %s566_s12 = scalar_lea.vmem %s493_s11, 16  ;;  %s570_s13 = scalar_lea.vmem %s493_s11, 32 }
  0x14   :  { %v357_v36 = vld [vmem:[%s796_s3 + $0x40] sm:$0xff]  ;;  %v49_v37 = vld [vmem:[%s795_s2 + $0x50] sm:$0xff]  ;;  %v358_v38 = vld [vmem:[%s796_s3 + $0x48] sm:$0xff]  ;;  %p567_p0 = scmp.ne.s32.totalorder %s493_s11, %s566_s12  ;;  %p571_p1 = scmp.lt.s32.totalorder %s493_s11, %s493_s11 }
  0x15   :  { %v50_v39 = vld [vmem:[%s795_s2 + $0x58] sm:$0xff]  ;;  %v359_v40 = vld [vmem:[%s796_s3 + $0x50] sm:$0xff]  ;;  %v51_v41 = vld [vmem:[%s795_s2 + $0x60] sm:$0xff]  ;;  %p572_p2 = scmp.lt.s32.totalorder %s570_s13, %s566_s12 }
  0x16   :  { %v360_v42 = vld [vmem:[%s796_s3 + $0x58] sm:$0xff]  ;;  %v52_v43 = vld [vmem:[%s795_s2 + $0x68] sm:$0xff]  ;;  %v361_v44 = vld [vmem:[%s796_s3 + $0x60] sm:$0xff] }
  0x17   :  { %387 = vperm.xlu1 %565, %v353_v28   ;;  %87 = vperm.xlu0 %564, %v45_v29   ;;  %v53_v45 = vld [vmem:[%s795_s2 + $0x70] sm:$0xff]  ;;  %v362_v46 = vld [vmem:[%s796_s3 + $0x68] sm:$0xff]  ;;  %v54_v47 = vld [vmem:[%s795_s2 + $0x78] sm:$0xff]  ;;  %p573_p3 = por %p572_p2, %p571_p1 }
  0x18   :  { %v364_v48 = vld [vmem:[%s796_s3 + $0x78] sm:$0xff]  ;;  %v363_v49 = vld [vmem:[%s796_s3 + $0x70] sm:$0xff] }
  0x19   :  { %p574_p4 = pnand %p573_p3, %p567_p0 }
  0x1b   :  { %392 = vperm.xlu1 %565, %v354_v30   ;;  %92 = vperm.xlu0 %564, %v46_v31  }
  0x1f   :  { %397 = vperm.xlu1 %565, %v355_v32   ;;  %97 = vperm.xlu0 %564, %v47_v33  }
  0x23   :  { %402 = vperm.xlu1 %565, %v356_v34   ;;  %102 = vperm.xlu0 %564, %v48_v35  }
  0x27   :  { %407 = vperm.xlu1 %565, %v357_v36   ;;  %107 = vperm.xlu0 %564, %v49_v37  }
  0x2b   :  { %412 = vperm.xlu1 %565, %v358_v38   ;;  %112 = vperm.xlu0 %564, %v50_v39  }
  0x2f   :  { %417 = vperm.xlu1 %565, %v359_v40   ;;  %117 = vperm.xlu0 %564, %v51_v41  }
  0x33   :  { %422 = vperm.xlu1 %565, %v360_v42   ;;  %122 = vperm.xlu0 %564, %v52_v43  }
  0x37   :  { %427 = vperm.xlu1 %565, %v361_v44   ;;  %127 = vperm.xlu0 %564, %v53_v45  }
  0x3b   :  { %432 = vperm.xlu1 %565, %v362_v46   ;;  %132 = vperm.xlu0 %564, %v54_v47  }
  0x3f   :  { %442 = vperm.xlu1 %565, %v364_v48   ;;  %437 = vperm.xlu0 %564, %v363_v49  }
  0x7e   :  { %v58_v50 = vpop.permute.xlu0 %57  ;;  %v68_v51 = vpop.permute.xlu1 %67 }
  0x82   :  { %v63_v52 = vpop.permute.xlu0 %62  ;;  %v73_v53 = vpop.permute.xlu1 %72 }
  0x86   :  { %v78_v54 = vpop.permute.xlu0 %77  ;;  %v368_v55 = vpop.permute.xlu1 %367 }
  0x8a   :  { %v373_v56 = vpop.permute.xlu0 %372  ;;  %v378_v57 = vpop.permute.xlu1 %377 }
  0x8e   :  { %v83_v58 = vpop.permute.xlu0 %82  ;;  %v383_v59 = vpop.permute.xlu1 %382 }
  0x92   :  { %v88_v60 = vpop.permute.xlu0 %87  ;;  %v388_v61 = vpop.permute.xlu1 %387 }
  0x96   :  { %v93_v62 = vpop.permute.xlu0 %92  ;;  %v393_v63 = vpop.permute.xlu1 %392 }
  0x9a   :  { %v98_v0 = vpop.permute.xlu0 %97  ;;  %v398_v1 = vpop.permute.xlu1 %397 }
  0x9e   :  { %v103_v2 = vpop.permute.xlu0 %102  ;;  %v403_v3 = vpop.permute.xlu1 %402 }
  0xa2   :  { %v108_v4 = vpop.permute.xlu0 %107  ;;  %v408_v5 = vpop.permute.xlu1 %407 }
  0xa6   :  { %v113_v11 = vpop.permute.xlu0 %112  ;;  %v413_v15 = vpop.permute.xlu1 %412 }
  0xaa   :  { %v118_v28 = vpop.permute.xlu0 %117  ;;  %v418_v30 = vpop.permute.xlu1 %417 }
  0xae   :  { %v123_v46 = vpop.permute.xlu0 %122 }
  0xc6   :  { %v538_v6 = vpop.f32.mrf.mxu0  ;;  %v550_v7 = vpop.f32.mrf.mxu1 }
  0xc7   :  { %v260_v8 = vadd.f32 %v538_v6, %v63_v52  ;;  %v300_v47 = vadd.f32 %v550_v7, %v103_v2 }
  0xc8   :  { %v254_v9 = vpop.f32.mrf.mxu0  ;;  %v294_v10 = vpop.f32.mrf.mxu1 }
  0xc9   :  { %v255_v12 = vadd.f32 %v254_v9, %v58_v50  ;;  %v334_v16 = vmax.f32 %v260_v8, 0.0  ;;  %v295_v42 = vadd.f32 %v294_v10, %v98_v0 }
  0xca   :  { %v541_v13 = vpop.f32.mrf.mxu0  ;;  %v553_v14 = vpop.f32.mrf.mxu1 }
  0xcb   :  { %v333_v17 = vmax.f32 %v255_v12, 0.0  ;;  %v270_v18 = vadd.f32 %v541_v13, %v73_v53  ;;  %v446_v25 = vmul.f32 %v373_v56, %v334_v16  ;;  %v423_v53 = vpop.permute.xlu1 %422 }
  0xcc   :  { %v264_v19 = vpop.f32.mrf.mxu0  ;;  %v304_v23 = vpop.f32.mrf.mxu1 }
  0xcd   :  { %v445_v20 = vmul.f32 %v368_v55, %v333_v17  ;;  %v265_v21 = vadd.f32 %v264_v19, %v68_v51  ;;  %v336_v22 = vmax.f32 %v270_v18, 0.0  ;;  %v305_v55 = vadd.f32 %v304_v23, %v108_v4 }
  0xce   :  { %v544_v24 = vpop.f32.mrf.mxu0  ;;  %v556_v35 = vpop.f32.mrf.mxu1 }
  0xcf   :  { %v335_v26 = vmax.f32 %v265_v21, 0.0  ;;  %v280_v27 = vadd.f32 %v544_v24, %v83_v58  ;;  %v461_v31 = vadd.f32 %v446_v25, %v445_v20  ;;  %v448_v34 = vmul.f32 %v383_v59, %v336_v22  ;;  %v428_v7 = vpop.permute.xlu1 %427 }
  0xd0   :  { %v274_v29 = vpop.f32.mrf.mxu0  ;;  %v314_v48 = vpop.f32.mrf.mxu1  ;;  %v342_v59 = vmax.f32 %v300_v47, 0.0  ;;  %v320_v13 = vadd.f32 %v556_v35, %v123_v46 }
  0xd1   :  { %v447_v32 = vmul.f32 %v378_v57, %v335_v26  ;;  %v275_v33 = vadd.f32 %v274_v29, %v78_v54  ;;  %v338_v38 = vmax.f32 %v280_v27, 0.0  ;;  %v341_v54 = vmax.f32 %v295_v42, 0.0 }
  0xd2   :  { %v547_v36 = vpop.f32.mrf.mxu0  ;;  %v559_v58 = vpop.f32.mrf.mxu1  ;;  %v315_v9 = vadd.f32 %v314_v48, %v118_v28  ;;  %v454_v10 = vmul.f32 %v413_v15, %v342_v59 }
  0xd3   :  { %v462_v37 = vadd.f32 %v461_v31, %v447_v32  ;;  %v337_v39 = vmax.f32 %v275_v33, 0.0  ;;  %v290_v40 = vadd.f32 %v547_v36, %v93_v62  ;;  %v450_v49 = vmul.f32 %v393_v63, %v338_v38  ;;  %v433_v21 = vpop.permute.xlu1 %432 }
  0xd4   :  { %v284_v41 = vpop.f32.mrf.mxu0  ;;  %v310_v62 = vadd.f32 %v553_v14, %v113_v11  ;;  %v453_v8 = vmul.f32 %v408_v5, %v341_v54  ;;  %v324_v63 = vpop.f32.mrf.mxu1  ;;  %v345_v4 = vmax.f32 %v315_v9, 0.0  ;;  %v346_v11 = vmax.f32 %v320_v13, 0.0 }
  0xd5   :  { %v449_v43 = vmul.f32 %v388_v61, %v337_v39  ;;  %v463_v44 = vadd.f32 %v462_v37, %v448_v34  ;;  %v285_v45 = vadd.f32 %v284_v41, %v88_v60  ;;  %v340_v51 = vmax.f32 %v290_v40, 0.0  ;;  %v128_v61 = vpop.permute.xlu0 %127 }
  0xd6   :  { %v343_v60 = vmax.f32 %v305_v55, 0.0  ;;  %v344_v12 = vmax.f32 %v310_v62, 0.0  ;;  %v325_v18 = vadd.f32 %v324_v63, %v128_v61  ;;  %v457_v5 = vmul.f32 %v428_v7, %v345_v4 }
  0xd7   :  { %v464_v50 = vadd.f32 %v463_v44, %v449_v43  ;;  %v339_v52 = vmax.f32 %v285_v45, 0.0  ;;  %v452_v6 = vmul.f32 %v403_v3, %v340_v51  ;;  %v458_v24 = vmul.f32 %v433_v21, %v346_v11  ;;  %v443_v29 = vpop.permute.xlu1 %442 }
  0xd8   :  { %v455_v17 = vmul.f32 %v418_v30, %v343_v60  ;;  %v456_v20 = vmul.f32 %v423_v53, %v344_v12  ;;  %v347_v22 = vmax.f32 %v325_v18, 0.0  ;;  %v483_v38 = vstv %s797_s4 }
  0xd9   :  { %v451_v56 = vmul.f32 %v398_v1, %v339_v52  ;;  %v465_v57 = vadd.f32 %v464_v50, %v450_v49  ;;  %v133_v19 = vpop.permute.xlu0 %132 }
  0xda   :  { %v330_v3 = vadd.f32 %v559_v58, %v133_v19 }
  0xdb   :  { %v466_v0 = vadd.f32 %v465_v57, %v451_v56 }
  0xdc   :  { %v348_v25 = vmax.f32 %v330_v3, 0.0 }
  0xdd   :  { %v467_v2 = vadd.f32 %v466_v0, %v452_v6  ;;  %v438_v15 = vpop.permute.xlu0 %437 }
  0xde   :  { %v459_v27 = vmul.f32 %v438_v15, %v347_v22  ;;  %v460_v30 = vmul.f32 %v443_v29, %v348_v25 }
  0xdf   :  { %v468_v16 = vadd.f32 %v467_v2, %v453_v8 }
  0xe1   :  { %v469_v1 = vadd.f32 %v468_v16, %v454_v10 }
  0xe3   :  { %v470_v14 = vadd.f32 %v469_v1, %v455_v17 }
  0xe5   :  { %v471_v23 = vadd.f32 %v470_v14, %v456_v20 }
  0xe7   :  { %v472_v26 = vadd.f32 %v471_v23, %v457_v5 }
  0xe9   :  { %v473_v28 = vadd.f32 %v472_v26, %v458_v24 }
  0xeb   :  { %v474_v31 = vadd.f32 %v473_v28, %v459_v27 }
  0xed   :  { %v475_v32 = vadd.f32 %v474_v31, %v460_v30 }
  0xef   :  { %v476_v33 = vrot.slane %v475_v32, 4 }
  0xf1   :  { %v477_v34 = vadd.f32 %v476_v33, %v475_v32 }
  0xf3   :  { %v478_v35 = vrot.slane %v477_v34, 2 }
  0xf5   :  { %v479_v36 = vadd.f32 %v478_v35, %v477_v34 }
  0xf7   :  { %v480_v37 = vrot.slane %v479_v36, 1 }
  0xf9   :  { %v481_v39 = vadd.f32 %v480_v37, %v479_v36 }
  0xfb   :  { %v484_v40 = vadd.f32 %v483_v38, %v481_v39 }
  0xfd   :  { %485 = vst [vmem:[#allocation3] sm:$0x1] %v484_v40 }
  0xfe   :  { %577 = shalt.err (!%p574_p4)
}
  0xff   :  { %495 = dma.vmem_to_hbm [thread:$0]  %s493_s11, 16, %s798_s5, [#allocation4]  }
 0x100   :  { %586 = dma.done.wait [#allocation4], 16  }
 0x101   :  { %587 = vsyncadd [#allocation4], 4294967280 }
 0x102   :  { %499 = vsyncpa [#allocation4], 1 }

</bundles_post_ra>
